<compile_context>
chip_gen: v7x
topology: tpu7x:2x2x1
jax: 0.10.0
libtpu: 0.0.40
codegen_flags: <defaults>
</compile_context>

<pallas_src>
import functools

import jax
import jax.numpy as jnp
from jax import lax
from jax.experimental import pallas as pl
from jax.experimental.pallas import tpu as pltpu


def _round_up(x, m):
    return -(-x // m) * m


def _pick_interleave(batch):
    """Largest L in {32,16,8,4,2,1} dividing batch (keeps the reshape free).

    L=32 gives a 320-lane working width (83% lane-dense after padding to 384)
    with only ~2 MB of kron'ed weights; larger L grows weights as L^2.
    Odd batch sizes degrade gracefully to L=1 (still correct, just sparser
    lanes) — callers that can pad their batch to a multiple of 32 get the
    densest path.
    """
    for cand in (32, 16, 8, 4, 2):
        if batch % cand == 0:
            return cand
    return 1


def _encoder_kernel(x_ref, g_ref, w1a_ref, w1b_ref, w2_ref, w3_ref, b_ref,
                    out_ref):
    """One (tbf, L*IL) block of L-interleaved batch rows -> (tbf, L*OL).

    Lane j = g*IL + f of a flat row holds feature f of interleaved batch row
    g.  The kron(I_L, .) block-diagonal weights keep the L rows independent,
    so every op below is simultaneously lane-dense and row-local.
    """
    x = x_ref[...].astype(jnp.float32)                     # (tbf, L*IL)

    # F.normalize(x, p=2, dim=-1) = x / max(||x||, 1e-12)
    #                             = x * rsqrt(max(sum(x^2), 1e-24)).
    # The block-diagonal all-ones matrix G computes each row-group's sum of
    # squares AND broadcasts it back to every lane of that group in one MXU
    # pass; rsqrt goes to the EUP.
    ss = jnp.dot(x * x, g_ref[...], preferred_element_type=jnp.float32)
    x_n = x * lax.rsqrt(jnp.maximum(ss, 1e-24))

    # Layer 1, first half of the fused concat (normalized part).
    h = jnp.dot(x_n, w1a_ref[...], preferred_element_type=jnp.float32)

    # safe_log(|x|, eps=1e-7) = log(relu(|x|)+1e-7) = log(|x|+1e-7).
    # Computed after the first dot so x_n and x_log are never both live
    # (reduces working set / spills).
    x_log = jnp.log(jnp.abs(x) + 1e-7)
    h = h + jnp.dot(x_log, w1b_ref[...], preferred_element_type=jnp.float32)
    h = jnp.maximum(h + b_ref[0], 0.0)

    # Layer 2
    h = jnp.dot(h, w2_ref[...], preferred_element_type=jnp.float32)
    h = jnp.maximum(h + b_ref[1], 0.0)

    # Layer 3 (no activation)
    h = jnp.dot(h, w3_ref[...], preferred_element_type=jnp.float32) + b_ref[2]

    out_ref[...] = h.astype(out_ref.dtype)                 # lane-dense store


def sequence_encoder_forward(seq, params, *, input_length=10, output_length=10,
                             batch_tile=16384):
    """seq: (..., IL) -> (B, OL) with B = prod(leading dims).

    Output dtype follows seq.dtype (intentional deviation: the torch module
    with f32 weights always returns f32; bf16 callers here get bf16 out and
    move half the HBM bytes).
    """
    IL, OL = input_length, output_length
    x = seq.reshape(-1, IL)
    B = x.shape[0]

    # --- lane-interleave: fold L batch rows into one flat row (free reshape).
    L = _pick_interleave(B)
    F = B // L                       # flat rows
    LW, LWo = L * IL, L * OL         # flat in/out widths
    x_flat = x.reshape(F, LW)

    # --- tiling: big blocks amortize the ~0.35us/step fixed cost, but keep
    #     >=2 (ideally ~4) grid steps so the 'parallel' axis can shard across
    #     v7x's two TensorCores and DMA/compute pipelining never collapses.
    padded_lw = _round_up(LW, 128)                         # VMEM lane padding
    rows_cap = max(8, min(batch_tile // L,
                          (1 << 20) // (4 * padded_lw)) // 8 * 8)
    if F <= 8:
        tbf = F                      # single full-extent block (always legal)
    else:
        # aim for ~4 steps, never shrink below 64 flat rows unless the
        # 2-step guarantee requires it.
        tbf = min(rows_cap, max(64, _round_up(pl.cdiv(F, 4), 8)))
        tbf = min(tbf, _round_up(pl.cdiv(F, 2), 8))        # guarantee >=2 steps
    grid = (pl.cdiv(F, tbf),)

    # --- block-diagonal (kron) constants; torch Linear is y = x @ W.T + b.
    f32 = jnp.float32
    eye_l = jnp.eye(L, dtype=f32)
    g_mat = jnp.kron(eye_l, jnp.ones((IL, IL), f32))              # (LW, LW)
    w1a = jnp.kron(eye_l, params["w1a"].T.astype(f32))            # (LW, LWo)
    w1b = jnp.kron(eye_l, params["w1b"].T.astype(f32))            # (LW, LWo)
    w2 = jnp.kron(eye_l, params["w2"].T.astype(f32))              # (LWo, LWo)
    w3 = jnp.kron(eye_l, params["w3"].T.astype(f32))              # (LWo, LWo)
    bias = jnp.stack([jnp.tile(params["b1"].astype(f32), L),
                      jnp.tile(params["b2"].astype(f32), L),
                      jnp.tile(params["b3"].astype(f32), L)])[:, None, :]

    out_flat = pl.pallas_call(
        _encoder_kernel,
        out_shape=jax.ShapeDtypeStruct((F, LWo), seq.dtype),
        grid_spec=pltpu.PrefetchScalarGridSpec(
            num_scalar_prefetch=0,
            grid=grid,
            in_specs=[
                pl.BlockSpec((tbf, LW), lambda i: (i, 0)),        # activations
                pl.BlockSpec((LW, LW), lambda i: (0, 0)),         # G
                pl.BlockSpec((LW, LWo), lambda i: (0, 0)),        # W1a
                pl.BlockSpec((LW, LWo), lambda i: (0, 0)),        # W1b
                pl.BlockSpec((LWo, LWo), lambda i: (0, 0)),       # W2
                pl.BlockSpec((LWo, LWo), lambda i: (0, 0)),       # W3
                pl.BlockSpec((3, 1, LWo), lambda i: (0, 0, 0)),   # biases
            ],
            out_specs=pl.BlockSpec((tbf, LWo), lambda i: (i, 0)),
        ),
        compiler_params=pltpu.CompilerParams(
            dimension_semantics=("parallel",),
            vmem_limit_bytes=32 * 1024 * 1024,   # v5e default is 16 MiB
        ),
    )(x_flat, g_mat, w1a, w1b, w2, w3, bias)

    return out_flat.reshape(B, OL)               # free (contiguous) reshape


def init_params(key, input_length=10, output_length=10):
    """Deterministic synthetic parameters (PyTorch-style uniform +-1/sqrt(fan_in)).

    Weights in torch (out_features, in_features) layout; the wrapper builds
    the kron'ed block-diagonal versions per batch size.
    """
    IL, OL = input_length, output_length
    ks = jax.random.split(key, 6)

    def lin(kw, kb, fan_in, fan_out):
        lim = 1.0 / jnp.sqrt(jnp.asarray(fan_in, jnp.float32))
        w = jax.random.uniform(kw, (fan_out, fan_in), jnp.float32, -lim, lim)
        b = jax.random.uniform(kb, (fan_out,), jnp.float32, -lim, lim)
        return w, b

    w1, b1 = lin(ks[0], ks[1], 2 * IL, OL)   # Linear(2*IL, OL)
    w2, b2 = lin(ks[2], ks[3], OL, OL)       # Linear(OL, OL)
    w3, b3 = lin(ks[4], ks[5], OL, OL)       # Linear(OL, OL)

    return {
        "w1a": w1[:, :IL],   # acts on the normalized part of the concat
        "w1b": w1[:, IL:],   # acts on the log part of the concat
        "w2": w2,
        "w3": w3,
        "b1": b1, "b2": b2, "b3": b3,
    }


def _reference(seq, params, input_length=10):
    """Pure-JAX reference mirroring the PyTorch forward."""
    x = seq.reshape(-1, input_length).astype(jnp.float32)
    l2 = jnp.sqrt(jnp.sum(x * x, axis=-1, keepdims=True))
    xn = x / jnp.maximum(l2, 1e-12)
    xl = jnp.log(jnp.maximum(jnp.abs(x), 0.0) + 1e-7)
    h = jnp.concatenate([xn, xl], axis=-1)
    w1 = jnp.concatenate([params["w1a"], params["w1b"]], axis=1)  # (OL, 2*IL)
    h = jnp.maximum(h @ w1.T + params["b1"], 0.0)
    h = jnp.maximum(h @ params["w2"].T + params["b2"], 0.0)
    return h @ params["w3"].T + params["b3"]


if __name__ == "__main__":
    IL, OL = 10, 10
    key = jax.random.PRNGKey(0)
    k1, k2, k3, kp = jax.random.split(key, 4)
    params = init_params(kp, IL, OL)

    fwd = jax.jit(functools.partial(
        sequence_encoder_forward, input_length=IL, output_length=OL))

    # --- small 3-D input: exercises reshape(-1, IL); L=8, single block.
    seq_small = jax.random.normal(k1, (2, 4, IL), jnp.float32)    # B = 8
    out_small = jax.block_until_ready(fwd(seq_small, params))
    ref_small = _reference(seq_small, params, IL)
    assert out_small.shape == (8, OL), out_small.shape
    assert jnp.allclose(out_small, ref_small, atol=1e-4, rtol=1e-4), (
        float(jnp.max(jnp.abs(out_small - ref_small))))

    # --- multiple-of-32 batch: L=32, 320-lane dense path, 2 grid steps,
    #     ragged last block (12 flat rows split 8 + 4).
    seq_mid = jax.random.normal(k2, (384, IL), jnp.float32)       # B = 384
    out_mid = jax.block_until_ready(fwd(seq_mid, params))
    ref_mid = _reference(seq_mid, params, IL)
    assert out_mid.shape == (384, OL), out_mid.shape
    assert jnp.allclose(out_mid, ref_mid, atol=1e-4, rtol=1e-4), (
        float(jnp.max(jnp.abs(out_mid - ref_mid))))

    # --- batch NOT divisible by the block (reviewer concern): B=300 -> L=4,
    #     75 flat rows, 2 ragged grid steps; checks no tail contamination.
    seq_rag = jax.random.normal(k3, (300, IL), jnp.float32)       # B = 300
    out_rag = jax.block_until_ready(fwd(seq_rag, params))
    ref_rag = _reference(seq_rag, params, IL)
    assert out_rag.shape == (300, OL), out_rag.shape
    assert jnp.allclose(out_rag, ref_rag, atol=1e-4, rtol=1e-4), (
        float(jnp.max(jnp.abs(out_rag - ref_rag))))

    print("KERNEL_OK")
</pallas_src>

<mosaic_0001>
module attributes {stable_mosaic.version = 11 : i64} {
  func.func @_encoder_kernel(%arg0: i32, %arg1: memref<1x80xf32, #tpu.memory_space<vmem>>, %arg2: memref<80x80xf32, #tpu.memory_space<vmem>>, %arg3: memref<80x80xf32, #tpu.memory_space<vmem>>, %arg4: memref<80x80xf32, #tpu.memory_space<vmem>>, %arg5: memref<80x80xf32, #tpu.memory_space<vmem>>, %arg6: memref<80x80xf32, #tpu.memory_space<vmem>>, %arg7: memref<3x1x80xf32, #tpu.memory_space<vmem>>, %arg8: memref<1x80xf32, #tpu.memory_space<vmem>>) attributes {dimension_semantics = [#tpu.dimension_semantics<parallel>], iteration_bounds = array<i64: 1>, scalar_prefetch = 0 : i64, scratch_operands = 0 : i64, tpu.core_type = #tpu.core_type<tc>, window_params = [{transform_indices = @transform_0, window_bounds = array<i64: 1, 80>}, {pipeline_mode = #tpu.pipeline_mode<synchronous>, transform_indices = @transform_1, window_bounds = array<i64: 80, 80>}, {pipeline_mode = #tpu.pipeline_mode<synchronous>, transform_indices = @transform_2, window_bounds = array<i64: 80, 80>}, {pipeline_mode = #tpu.pipeline_mode<synchronous>, transform_indices = @transform_3, window_bounds = array<i64: 80, 80>}, {pipeline_mode = #tpu.pipeline_mode<synchronous>, transform_indices = @transform_4, window_bounds = array<i64: 80, 80>}, {pipeline_mode = #tpu.pipeline_mode<synchronous>, transform_indices = @transform_5, window_bounds = array<i64: 80, 80>}, {pipeline_mode = #tpu.pipeline_mode<synchronous>, transform_indices = @transform_6, window_bounds = array<i64: 3, 1, 80>}, {transform_indices = @transform_7, window_bounds = array<i64: 1, 80>}]} {
    %c0 = arith.constant 0 : index
    %c0_0 = arith.constant 0 : index
    %0 = vector.load %arg1[%c0, %c0_0] : memref<1x80xf32, #tpu.memory_space<vmem>>, vector<1x80xf32>
    %1 = arith.mulf %0, %0 : vector<1x80xf32>
    %c0_1 = arith.constant 0 : index
    %c0_2 = arith.constant 0 : index
    %2 = vector.load %arg2[%c0_1, %c0_2] : memref<80x80xf32, #tpu.memory_space<vmem>>, vector<80x80xf32>
    %cst = arith.constant dense<0.000000e+00> : vector<1x80xf32>
    %3 = tpu.matmul %1, %2, %cst {dimension_numbers = #tpu.dot_dimension_numbers<[1], [0], [0], [1], [0, 0, 1, 1], [], []>} : vector<1x80xf32>, vector<80x80xf32>, vector<1x80xf32> -> vector<1x80xf32>
    %cst_3 = arith.constant 1.000000e-24 : f32
    %4 = vector.broadcast %cst_3 : f32 to vector<1x80xf32>
    %5 = arith.maximumf %3, %4 : vector<1x80xf32>
    %6 = math.rsqrt %5 : vector<1x80xf32>
    %7 = arith.mulf %0, %6 : vector<1x80xf32>
    %c0_4 = arith.constant 0 : index
    %c0_5 = arith.constant 0 : index
    %8 = vector.load %arg3[%c0_4, %c0_5] : memref<80x80xf32, #tpu.memory_space<vmem>>, vector<80x80xf32>
    %cst_6 = arith.constant dense<0.000000e+00> : vector<1x80xf32>
    %9 = tpu.matmul %7, %8, %cst_6 {dimension_numbers = #tpu.dot_dimension_numbers<[1], [0], [0], [1], [0, 0, 1, 1], [], []>} : vector<1x80xf32>, vector<80x80xf32>, vector<1x80xf32> -> vector<1x80xf32>
    %10 = math.absf %0 : vector<1x80xf32>
    %cst_7 = arith.constant 1.000000e-07 : f32
    %11 = vector.broadcast %cst_7 : f32 to vector<1x80xf32>
    %12 = arith.addf %10, %11 : vector<1x80xf32>
    %13 = math.log %12 : vector<1x80xf32>
    %c0_8 = arith.constant 0 : index
    %c0_9 = arith.constant 0 : index
    %14 = vector.load %arg4[%c0_8, %c0_9] : memref<80x80xf32, #tpu.memory_space<vmem>>, vector<80x80xf32>
    %cst_10 = arith.constant dense<0.000000e+00> : vector<1x80xf32>
    %15 = tpu.matmul %13, %14, %cst_10 {dimension_numbers = #tpu.dot_dimension_numbers<[1], [0], [0], [1], [0, 0, 1, 1], [], []>} : vector<1x80xf32>, vector<80x80xf32>, vector<1x80xf32> -> vector<1x80xf32>
    %16 = arith.addf %9, %15 : vector<1x80xf32>
    %c0_11 = arith.constant 0 : index
    %c0_12 = arith.constant 0 : index
    %c0_13 = arith.constant 0 : index
    %17 = vector.load %arg7[%c0_11, %c0_12, %c0_13] : memref<3x1x80xf32, #tpu.memory_space<vmem>>, vector<1x1x80xf32>
    %18 = vector.shape_cast %17 : vector<1x1x80xf32> to vector<1x80xf32>
    %19 = arith.addf %16, %18 : vector<1x80xf32>
    %cst_14 = arith.constant 0.000000e+00 : f32
    %20 = vector.broadcast %cst_14 : f32 to vector<1x80xf32>
    %21 = arith.maximumf %19, %20 : vector<1x80xf32>
    %c0_15 = arith.constant 0 : index
    %c0_16 = arith.constant 0 : index
    %22 = vector.load %arg5[%c0_15, %c0_16] : memref<80x80xf32, #tpu.memory_space<vmem>>, vector<80x80xf32>
    %cst_17 = arith.constant dense<0.000000e+00> : vector<1x80xf32>
    %23 = tpu.matmul %21, %22, %cst_17 {dimension_numbers = #tpu.dot_dimension_numbers<[1], [0], [0], [1], [0, 0, 1, 1], [], []>} : vector<1x80xf32>, vector<80x80xf32>, vector<1x80xf32> -> vector<1x80xf32>
    %c1 = arith.constant 1 : index
    %c0_18 = arith.constant 0 : index
    %c0_19 = arith.constant 0 : index
    %24 = vector.load %arg7[%c1, %c0_18, %c0_19] : memref<3x1x80xf32, #tpu.memory_space<vmem>>, vector<1x1x80xf32>
    %25 = vector.shape_cast %24 : vector<1x1x80xf32> to vector<1x80xf32>
    %26 = arith.addf %23, %25 : vector<1x80xf32>
    %cst_20 = arith.constant 0.000000e+00 : f32
    %27 = vector.broadcast %cst_20 : f32 to vector<1x80xf32>
    %28 = arith.maximumf %26, %27 : vector<1x80xf32>
    %c0_21 = arith.constant 0 : index
    %c0_22 = arith.constant 0 : index
    %29 = vector.load %arg6[%c0_21, %c0_22] : memref<80x80xf32, #tpu.memory_space<vmem>>, vector<80x80xf32>
    %cst_23 = arith.constant dense<0.000000e+00> : vector<1x80xf32>
    %30 = tpu.matmul %28, %29, %cst_23 {dimension_numbers = #tpu.dot_dimension_numbers<[1], [0], [0], [1], [0, 0, 1, 1], [], []>} : vector<1x80xf32>, vector<80x80xf32>, vector<1x80xf32> -> vector<1x80xf32>
    %c2 = arith.constant 2 : index
    %c0_24 = arith.constant 0 : index
    %c0_25 = arith.constant 0 : index
    %31 = vector.load %arg7[%c2, %c0_24, %c0_25] : memref<3x1x80xf32, #tpu.memory_space<vmem>>, vector<1x1x80xf32>
    %32 = vector.shape_cast %31 : vector<1x1x80xf32> to vector<1x80xf32>
    %33 = arith.addf %30, %32 : vector<1x80xf32>
    %c0_26 = arith.constant 0 : index
    %c0_27 = arith.constant 0 : index
    %34 = vector.load %arg8[%c0_26, %c0_27] : memref<1x80xf32, #tpu.memory_space<vmem>>, vector<1x80xf32>
    tpu.vector_store %arg8[%c0_26, %c0_27], %33 {strides = array<i32>} : memref<1x80xf32, #tpu.memory_space<vmem>>, vector<1x80xf32>,
    return
  }
  func.func @transform_0(%arg0: i32) -> (i32, i32) {
    %c0_i32 = arith.constant 0 : i32
    %c0_i32_0 = arith.constant 0 : i32
    return %arg0, %c0_i32 : i32, i32
  }
  func.func @transform_1(%arg0: i32) -> (i32, i32) {
    %c0_i32 = arith.constant 0 : i32
    %c0_i32_0 = arith.constant 0 : i32
    %c0_i32_1 = arith.constant 0 : i32
    return %c0_i32, %c0_i32_0 : i32, i32
  }
  func.func @transform_2(%arg0: i32) -> (i32, i32) {
    %c0_i32 = arith.constant 0 : i32
    %c0_i32_0 = arith.constant 0 : i32
    %c0_i32_1 = arith.constant 0 : i32
    return %c0_i32, %c0_i32_0 : i32, i32
  }
  func.func @transform_3(%arg0: i32) -> (i32, i32) {
    %c0_i32 = arith.constant 0 : i32
    %c0_i32_0 = arith.constant 0 : i32
    %c0_i32_1 = arith.constant 0 : i32
    return %c0_i32, %c0_i32_0 : i32, i32
  }
  func.func @transform_4(%arg0: i32) -> (i32, i32) {
    %c0_i32 = arith.constant 0 : i32
    %c0_i32_0 = arith.constant 0 : i32
    %c0_i32_1 = arith.constant 0 : i32
    return %c0_i32, %c0_i32_0 : i32, i32
  }
  func.func @transform_5(%arg0: i32) -> (i32, i32) {
    %c0_i32 = arith.constant 0 : i32
    %c0_i32_0 = arith.constant 0 : i32
    %c0_i32_1 = arith.constant 0 : i32
    return %c0_i32, %c0_i32_0 : i32, i32
  }
  func.func @transform_6(%arg0: i32) -> (i32, i32, i32) {
    %c0_i32 = arith.constant 0 : i32
    %c0_i32_0 = arith.constant 0 : i32
    %c0_i32_1 = arith.constant 0 : i32
    %c0_i32_2 = arith.constant 0 : i32
    return %c0_i32, %c0_i32_0, %c0_i32_1 : i32, i32, i32
  }
  func.func @transform_7(%arg0: i32) -> (i32, i32) {
    %c0_i32 = arith.constant 0 : i32
    %c0_i32_0 = arith.constant 0 : i32
    return %arg0, %c0_i32 : i32, i32
  }
}

</mosaic_0001>

<bundles_post_ra>
// kernel: tile.18
= control target key start
LH: loop header
LB: loop body
LE: loop exit
PB: predicated region body
PF: predicated region fallthrough
CT: control target
= control target key end

     0   :  { %s22_s0 = inlined_call_operand.vmem [shape: f32[10], index: 0, kind: input, shape index: {}]   ;;  %s23_s1 = inlined_call_operand.vmem [shape: f32[8,10], index: 1, kind: output, shape index: {}]  }
   0x1   :  { %v4_v0 = vld [vmem:[%s22_s0] ss:$0 sm:$0xff] }
   0x2   :  { %5 = vst [vmem:[%s23_s1] sm:$0xff] %v4_v0 }

// kernel: tile.27
= control target key start
LH: loop header
LB: loop body
LE: loop exit
PB: predicated region body
PF: predicated region fallthrough
CT: control target
= control target key end

     0   :  { %s67_s10 = smov 70   ;;  %s68_s11 = smov 50   ;;  %vm3_vm0 = vcmask 80896   ;;  %vm9_vm1 = vcmask 654896   ;;  %vm15_vm2 = vcmask 572896   ;;  %vm21_vm3 = vcmask 490896   ;;  %s111_s0 = inlined_call_operand.vmem [shape: f32[8,10], index: 0, kind: input, shape index: {}]   ;;  %s112_s1 = inlined_call_operand.vmem [shape: f32[1,80], index: 1, kind: output, shape index: {}]  }
   0x1   :  { %v53_v0 = vld [vmem:[%s111_s0 + $0x7] sm:$0x1]   ;;  %v55_v1 = vld [vmem:[%s111_s0 + $0x5] sm:$0x1]   ;;  %v54_v2 = vld [vmem:[%s111_s0 + $0x6] sm:$0x1]  }
   0x2   :  { %7 = vrot.lane.b32.xlu0 %v53_v0, %s67_s10  ;;  %19 = vrot.lane.b32.xlu1 %v55_v1, %s68_s11  ;;  %v56_v3 = vld [vmem:[%s111_s0 + $0x4] sm:$0x1]   ;;  %v2_v4 = vld [vmem:[%s111_s0] sm:$0x1]   ;;  %s69_s18 = smov 60   ;;  %s70_s19 = smov 40  }
   0x3   :  { %4 = vst.msk [vmem:[#allocation0] sm:$0x1] %vm3_vm0, %v2_v4   ;;  %v57_v5 = vld [vmem:[%s111_s0 + $0x3] sm:$0x1]   ;;  %v58_v6 = vld [vmem:[%s111_s0 + $0x2] sm:$0x1]  }
   0x4   :  { %s71_s24 = smov 30   ;;  %s72_s25 = smov 20   ;;  %v59_v7 = vld [vmem:[%s111_s0 + $0x1] sm:$0x1]   ;;  %vm27_vm4 = vcmask 408896   ;;  %vm33_vm5 = vcmask 326896  }
   0x5   :  { %s73_s0 = smov 10   ;;  %vm39_vm6 = vcmask 244896   ;;  %vm45_vm7 = vcmask 162896  }
   0x6   :  { %13 = vrot.lane.b32.xlu0 %v54_v2, %s69_s18  ;;  %25 = vrot.lane.b32.xlu1 %v56_v3, %s70_s19 }
   0xa   :  { %31 = vrot.lane.b32.xlu0 %v57_v5, %s71_s24  ;;  %37 = vrot.lane.b32.xlu1 %v58_v6, %s72_s25 }
   0xe   :  { %43 = vrot.lane.b32.xlu0 %v59_v7, %s73_s0 }
  0x74   :  { %v8_v8 = vpop.permute.xlu0 %7   ;;  %v20_v9 = vpop.permute.xlu1 %19  }
  0x75   :  { %10 = vst.msk [vmem:[#allocation0] sm:$0x1] %vm9_vm1, %v8_v8  }
  0x78   :  { %v14_v10 = vpop.permute.xlu0 %13   ;;  %v26_v11 = vpop.permute.xlu1 %25  }
  0x79   :  { %16 = vst.msk [vmem:[#allocation0] sm:$0x1] %vm15_vm2, %v14_v10  }
  0x7a   :  { %22 = vst.msk [vmem:[#allocation0] sm:$0x1] %vm21_vm3, %v20_v9  }
  0x7b   :  { %28 = vst.msk [vmem:[#allocation0] sm:$0x1] %vm27_vm4, %v26_v11  }
  0x7c   :  { %v32_v12 = vpop.permute.xlu0 %31   ;;  %v38_v13 = vpop.permute.xlu1 %37  }
  0x7d   :  { %34 = vst.msk [vmem:[#allocation0] sm:$0x1] %vm33_vm5, %v32_v12  }
  0x7e   :  { %40 = vst.msk [vmem:[#allocation0] sm:$0x1] %vm39_vm6, %v38_v13  }
  0x80   :  { %v44_v14 = vpop.permute.xlu0 %43  }
  0x81   :  { %46 = vst.msk [vmem:[#allocation0] sm:$0x1] %vm45_vm7, %v44_v14  }
  0x88   :  { %v50_v15 = vld [vmem:[#allocation0] sm:$0x1] }
  0x89   :  { %52 = vst [vmem:[%s112_s1] sm:$0x1] %v50_v15 }

// kernel: sequence_encoder_forward.1
= control target key start
LH: loop header
LB: loop body
LE: loop exit
PB: predicated region body
PF: predicated region fallthrough
CT: control target
= control target key end

     0   :  { %v724_v0 = vmov 0.0|0.0   ;;  %vm725_vm0 = vmmov 0   ;;  %v726_v4 = vmov 0.0   ;;  %vm38_vm1 = vcmask 654336   ;;  %s978_s1 = inlined_call_operand.vmem [shape: f32[80,80], index: 1, kind: input, shape index: {}]   ;;  %s979_s3 = inlined_call_operand.vmem [shape: f32[80,80], index: 3, kind: input, shape index: {}]   ;;  %s980_s0 = inlined_call_operand.vmem [shape: f32[1,80], index: 0, kind: input, shape index: {}]   ;;  %s981_s2 = inlined_call_operand.vmem [shape: f32[80,80], index: 2, kind: input, shape index: {}]   ;;  %s982_s4 = inlined_call_operand.vmem [shape: f32[80,80], index: 4, kind: input, shape index: {}]   ;;  %s983_s5 = inlined_call_operand.vmem [shape: f32[80,80], index: 5, kind: input, shape index: {}]   ;;  %s984_s6 = inlined_call_operand.vmem [shape: f32[3,1,80], index: 6, kind: input, shape index: {}]   ;;  %s985_s7 = inlined_call_operand.vmem [shape: f32[1,80], index: 7, kind: output, shape index: {}]  }
   0x1   :  { %642 = vmatprep.subr.bf16.mxu0 %v724_v0  ;;  %v28_v1 = vld [vmem:[%s978_s1] sm:$0xff]  ;;  %v29_v2 = vld [vmem:[%s978_s1 + $0x8] sm:$0xff]  ;;  %v30_v3 = vld [vmem:[%s978_s1 + $0x10] sm:$0xff]  ;;  %547 = vmatprep.mubr.msk.f32.mxu0 %vm725_vm0, %v726_v4  ;;  %vm459_vm2 = vcmask 647168  }
   0x2   :  { %v643_v5 = vpack.c.bf16 %v29_v2, %v28_v1  ;;  %v31_v6 = vld [vmem:[%s978_s1 + $0x18] sm:$0xff]  ;;  %657 = vmatprep.subr.bf16.mxu1 %v724_v0  ;;  %570 = vmatprep.mubr.msk.f32.mxu1 %vm725_vm0, %v726_v4  ;;  %v129_v8 = vld [vmem:[%s979_s3] sm:$0xff]  ;;  %v33_v10 = vld [vmem:[%s978_s1 + $0x28] sm:$0xff] }
   0x3   :  { %v646_v7 = vpack.c.bf16 %v31_v6, %v30_v3  ;;  %v32_v9 = vld [vmem:[%s978_s1 + $0x20] sm:$0xff]  ;;  %v130_v11 = vld [vmem:[%s979_s3 + $0x8] sm:$0xff]  ;;  %v34_v14 = vld [vmem:[%s978_s1 + $0x30] sm:$0xff] }
   0x4   :  { %644 = vmatpush3.bf16.msra.mxu0 %v643_v5  ;;  %v658_v12 = vpack.c.bf16 %v130_v11, %v129_v8  ;;  %v649_v13 = vpack.c.bf16 %v33_v10, %v32_v9  ;;  %v35_v15 = vld [vmem:[%s978_s1 + $0x38] sm:$0xff]  ;;  %v36_v17 = vld [vmem:[%s978_s1 + $0x40] sm:$0xff]  ;;  %v37_v18 = vld [vmem:[%s978_s1 + $0x48] sm:$0xff] }
   0x5   :  { %645 = vmatprep.subr.bf16.mxu0 %v724_v0  ;;  %v652_v16 = vpack.c.bf16 %v35_v15, %v34_v14  ;;  %v655_v19 = vpack.c.bf16 %v37_v18, %v36_v17  ;;  %v816_v20 = vld [vmem:[%s980_s0] sm:$0x1]  ;;  %v116_v22 = vld [vmem:[%s981_s2 + $0x8] sm:$0xff]  ;;  %v131_v25 = vld [vmem:[%s979_s3 + $0x10] sm:$0xff] }
   0x6   :  { %659 = vmatpush3.bf16.msra.mxu1 %v658_v12  ;;  %v115_v21 = vld [vmem:[%s981_s2] sm:$0xff]  ;;  %v27_v23 = vmul.f32 %v816_v20, %v816_v20  ;;  %v132_v26 = vld [vmem:[%s979_s3 + $0x18] sm:$0xff]  ;;  %v117_v28 = vld [vmem:[%s981_s2 + $0x10] sm:$0xff]  ;;  %v125_v30 = vand.u32 2147483647, %v816_v20 }
   0x7   :  { %660 = vmatprep.subr.bf16.mxu1 %v724_v0  ;;  %v673_v24 = vpack.c.bf16 %v116_v22, %v115_v21  ;;  %v661_v27 = vpack.c.bf16 %v132_v26, %v131_v25  ;;  %v118_v29 = vld [vmem:[%s981_s2 + $0x18] sm:$0xff]  ;;  %v133_v33 = vld [vmem:[%s979_s3 + $0x20] sm:$0xff]  ;;  %v134_v34 = vld [vmem:[%s979_s3 + $0x28] sm:$0xff] }
   0x8   :  { %647 = vmatpush3.bf16.msra.mxu0 %v646_v7  ;;  %v676_v31 = vpack.c.bf16 %v118_v29, %v117_v28  ;;  %v126_v32 = vadd.f32 1e-07, %v125_v30  ;;  %v664_v35 = vpack.c.bf16 %v134_v34, %v133_v33  ;;  %v119_v36 = vld [vmem:[%s981_s2 + $0x20] sm:$0xff]  ;;  %v120_v37 = vld [vmem:[%s981_s2 + $0x28] sm:$0xff]  ;;  %v135_v39 = vld [vmem:[%s979_s3 + $0x30] sm:$0xff] }
   0x9   :  { %648 = vmatprep.subr.bf16.mxu0 %v724_v0  ;;  %v679_v38 = vpack.c.bf16 %v120_v37, %v119_v36  ;;  %v136_v40 = vld [vmem:[%s979_s3 + $0x38] sm:$0xff]  ;;  %v121_v41 = vld [vmem:[%s981_s2 + $0x30] sm:$0xff]  ;;  %v137_v45 = vld [vmem:[%s979_s3 + $0x40] sm:$0xff] }
   0xa   :  { %662 = vmatpush3.bf16.msra.mxu1 %v661_v27  ;;  %720 = vlog2.f32 %v126_v32  ;;  %v667_v42 = vpack.c.bf16 %v136_v40, %v135_v39  ;;  %v122_v43 = vld [vmem:[%s981_s2 + $0x38] sm:$0xff]  ;;  %v138_v46 = vld [vmem:[%s979_s3 + $0x48] sm:$0xff]  ;;  %v123_v47 = vld [vmem:[%s981_s2 + $0x40] sm:$0xff] }
   0xb   :  { %663 = vmatprep.subr.bf16.mxu1 %v724_v0  ;;  %v682_v44 = vpack.c.bf16 %v122_v43, %v121_v41  ;;  %v124_v48 = vld [vmem:[%s981_s2 + $0x48] sm:$0xff]  ;;  %v670_v49 = vpack.c.bf16 %v138_v46, %v137_v45  ;;  %v288_v53 = vld [vmem:[%s982_s4] sm:$0xff]  ;;  %v290_v55 = vld [vmem:[%s982_s4 + $0x10] sm:$0xff] }
   0xc   :  { %650 = vmatpush3.bf16.msra.mxu0 %v649_v13  ;;  %v685_v50 = vpack.c.bf16 %v124_v48, %v123_v47  ;;  %v289_v54 = vld [vmem:[%s982_s4 + $0x8] sm:$0xff]  ;;  %v291_v57 = vld [vmem:[%s982_s4 + $0x18] sm:$0xff]  ;;  %v292_v59 = vld [vmem:[%s982_s4 + $0x20] sm:$0xff] }
   0xd   :  { %651 = vmatprep.subr.bf16.mxu0 %v724_v0  ;;  %v688_v56 = vpack.c.bf16 %v289_v54, %v288_v53  ;;  %v691_v58 = vpack.c.bf16 %v291_v57, %v290_v55  ;;  %v293_v60 = vld [vmem:[%s982_s4 + $0x28] sm:$0xff]  ;;  %v294_v5 = vld [vmem:[%s982_s4 + $0x30] sm:$0xff]  ;;  %v295_v6 = vld [vmem:[%s982_s4 + $0x38] sm:$0xff] }
   0xe   :  { %665 = vmatpush3.bf16.msra.mxu1 %v664_v35  ;;  %v694_v61 = vpack.c.bf16 %v293_v60, %v292_v59  ;;  %v697_v7 = vpack.c.bf16 %v295_v6, %v294_v5  ;;  %v296_v10 = vld [vmem:[%s982_s4 + $0x40] sm:$0xff]  ;;  %v375_v13 = vld [vmem:[%s983_s5 + $0x8] sm:$0xff]  ;;  %v376_v14 = vld [vmem:[%s983_s5 + $0x10] sm:$0xff] }
   0xf   :  { %666 = vmatprep.subr.bf16.mxu1 %v724_v0  ;;  %v374_v12 = vld [vmem:[%s983_s5] sm:$0xff]  ;;  %v380_v21 = vld [vmem:[%s983_s5 + $0x30] sm:$0xff]  ;;  %v381_v22 = vld [vmem:[%s983_s5 + $0x38] sm:$0xff] }
  0x10   :  { %653 = vmatpush3.bf16.msra.mxu0 %v652_v16  ;;  %v703_v15 = vpack.c.bf16 %v375_v13, %v374_v12  ;;  %v377_v16 = vld [vmem:[%s983_s5 + $0x18] sm:$0xff]  ;;  %v378_v18 = vld [vmem:[%s983_s5 + $0x20] sm:$0xff] }
  0x11   :  { %654 = vmatprep.subr.bf16.mxu0 %v724_v0  ;;  %v706_v17 = vpack.c.bf16 %v377_v16, %v376_v14  ;;  %v285_v25 = vld [vmem:[%s984_s6] sm:$0x1]  ;;  %v468_v32 = vld [vmem:[%s984_s6 + $0x1] sm:$0x1]  ;;  %v470_v37 = vld [vmem:[%s984_s6 + $0x2] sm:$0x1] }
  0x12   :  { %668 = vmatpush3.bf16.msra.mxu1 %v667_v42  ;;  %v382_v30 = vld [vmem:[%s983_s5 + $0x40] sm:$0xff] }
  0x13   :  { %669 = vmatprep.subr.bf16.mxu1 %v724_v0 }
  0x14   :  { %656 = vmatpush3.bf16.msra.mxu0 %v655_v19  ;;  %v721_v51 = vpop.eup %720  ;;  %v379_v19 = vld [vmem:[%s983_s5 + $0x28] sm:$0xff] }
  0x15   :  { %672 = vmatprep.subr.bf16.mxu0 %v724_v0  ;;  %v128_v52 = vmul.f32 0.6931472, %v721_v51 }
  0x16   :  { %671 = vmatpush3.bf16.msra.mxu1 %v670_v49 }
  0x17   :  { %548 = vmatmul.mubr.msk.f32.vlgmr.msra.gmra.mrb[0].mxu0 %vm38_vm1, %v27_v23  ;;  %687 = vmatprep.subr.bf16.mxu1 %v724_v0  ;;  %v712_v23 = vpack.c.bf16 %v381_v22, %v380_v21 }
  0x18   :  { %674 = vmatpush3.bf16.msra.mxu0 %v673_v24  ;;  %593 = vmatprep.mubr.msk.f32.mxu0 %vm725_vm0, %v726_v4 }
  0x19   :  { %675 = vmatprep.subr.bf16.mxu0 %v724_v0  ;;  %571 = vmatmul.mubr.msk.f32.vlgmr.msra.gmra.mrb[0].mxu1 %vm38_vm1, %v128_v52 }
  0x1a   :  { %616 = vmatprep.mubr.msk.f32.mxu1 %vm725_vm0, %v726_v4  ;;  %689 = vmatpush3.bf16.msra.mxu1 %v688_v56 }
  0x1b   :  { %690 = vmatprep.subr.bf16.mxu1 %v724_v0 }
  0x1c   :  { %677 = vmatpush3.bf16.msra.mxu0 %v676_v31  ;;  %v383_v31 = vld [vmem:[%s983_s5 + $0x48] sm:$0xff] }
  0x1d   :  { %678 = vmatprep.subr.bf16.mxu0 %v724_v0 }
  0x1e   :  { %692 = vmatpush3.bf16.msra.mxu1 %v691_v58 }
  0x1f   :  { %693 = vmatprep.subr.bf16.mxu1 %v724_v0 }
  0x20   :  { %680 = vmatpush3.bf16.msra.mxu0 %v679_v38 }
  0x21   :  { %681 = vmatprep.subr.bf16.mxu0 %v724_v0 }
  0x22   :  { %695 = vmatpush3.bf16.msra.mxu1 %v694_v61 }
  0x23   :  { %696 = vmatprep.subr.bf16.mxu1 %v724_v0 }
  0x24   :  { %683 = vmatpush3.bf16.msra.mxu0 %v682_v44 }
  0x25   :  { %684 = vmatprep.subr.bf16.mxu0 %v724_v0 }
  0x26   :  { %698 = vmatpush3.bf16.msra.mxu1 %v697_v7 }
  0x27   :  { %699 = vmatprep.subr.bf16.mxu1 %v724_v0 }
  0x28   :  { %686 = vmatpush3.bf16.msra.mxu0 %v685_v50 }
  0x29   :  { %702 = vmatprep.subr.bf16.mxu0 %v724_v0 }
  0xea   :  { %v108_v62 = vpop.f32.mrb[0].mxu0 }
  0xeb   :  { %v112_v63 = vmax.f32 %v108_v62, 1e-24  ;;  %v549_v1 = vpop.f32.mrb[1].mxu0 }
  0xec   :  { %v208_v8 = vpop.f32.mrb[0].mxu1 }
  0xed   :  { %722 = vrsqrt.f32 %v112_v63  ;;  %v572_v9 = vpop.f32.mrb[1].mxu1 }
  0xf7   :  { %v723_v2 = vpop.eup %722 }
  0xf8   :  { %v114_v3 = vmul.f32 %v723_v2, %v816_v20  ;;  %v709_v20 = vpack.c.bf16 %v379_v19, %v378_v18 }
  0xfa   :  { %594 = vmatmul.mubr.msk.f32.vlgmr.msra.gmra.mrb[2].mxu0 %vm38_vm1, %v114_v3 }
  0xfb   :  { %639 = vmatprep.mubr.msk.f32.mxu0 %vm725_vm0, %v726_v4  ;;  %v297_v4 = vld [vmem:[%s982_s4 + $0x48] sm:$0xff]  ;;  %704 = vmatpush3.bf16.msra.mxu0 %v703_v15 }
  0xfc   :  { %v700_v11 = vpack.c.bf16 %v297_v4, %v296_v10  ;;  %705 = vmatprep.subr.bf16.mxu0 %v724_v0 }
  0xfe   :  { %701 = vmatpush3.bf16.msra.mxu1 %v700_v11 }
  0xff   :  { %707 = vmatpush3.bf16.msra.mxu0 %v706_v17 }
 0x100   :  { %708 = vmatprep.subr.bf16.mxu0 %v724_v0 }
 0x103   :  { %710 = vmatpush3.bf16.msra.mxu0 %v709_v20 }
 0x104   :  { %711 = vmatprep.subr.bf16.mxu0 %v724_v0 }
 0x107   :  { %713 = vmatpush3.bf16.msra.mxu0 %v712_v23 }
 0x108   :  { %714 = vmatprep.subr.bf16.mxu0 %v724_v0  ;;  %v715_v0 = vpack.c.bf16 %v383_v31, %v382_v30 }
 0x10b   :  { %716 = vmatpush3.bf16.msra.mxu0 %v715_v0 }
 0x1cd   :  { %v281_v24 = vpop.f32.mrb[2].mxu0 }
 0x1ce   :  { %v282_v26 = vadd.f32 %v281_v24, %v208_v8  ;;  %v595_v27 = vpop.f32.mrb[3].mxu0 }
 0x1d0   :  { %v286_v28 = vadd.f32 %v285_v25, %v282_v26 }
 0x1d2   :  { %v287_v29 = vmax.f32 %v286_v28, 0.0 }
 0x1d4   :  { %617 = vmatmul.mubr.msk.f32.vlgmr.msra.gmra.mrb[2].mxu1 %vm38_vm1, %v287_v29 }
 0x2a7   :  { %v369_v33 = vpop.f32.mrb[2].mxu1 }
 0x2a8   :  { %v370_v34 = vadd.f32 %v468_v32, %v369_v33  ;;  %v618_v35 = vpop.f32.mrb[3].mxu1 }
 0x2aa   :  { %v373_v36 = vmax.f32 %v370_v34, 0.0 }
 0x2ac   :  { %640 = vmatmul.mubr.msk.f32.vlgmr.msra.gmra.mrb[4].mxu0 %vm38_vm1, %v373_v36 }
 0x37f   :  { %v455_v38 = vpop.f32.mrb[4].mxu0 }
 0x380   :  { %v456_v39 = vadd.f32 %v470_v37, %v455_v38  ;;  %v641_v40 = vpop.f32.mrb[5].mxu0 }
 0x382   :  { %460 = vst.msk [vmem:[%s985_s7] sm:$0x1] %vm459_vm2, %v456_v39 }

</bundles_post_ra>
